<compile_context>
chip_gen: v6e
topology: v6e:2x2x1
jax: 0.10.0
libtpu: 0.0.40
codegen_flags: <defaults>
</compile_context>

<pallas_src>
import jax
import jax.numpy as jnp
from jax.experimental import pallas as pl
from jax.experimental.pallas import tpu as pltpu

HIDDEN = 50


def _round_up(x, m):
    return ((x + m - 1) // m) * m


# ----------------------------------------------------------------------------
# Kernel: one batch tile per grid step.
#   s_ref    : (TB, s_space)  bf16   (batch tile, pipelined)
#   a_ref    : (TB, a_space)  bf16   (batch tile, pipelined)
#   ws_ref   : (s_space, 50)  bf16   (VMEM-resident across the grid)
#   wa_ref   : (a_space, 50)  bf16   (resident)
#   b_sa_ref : (1, 50)        f32    (resident; bs + ba)
#   wq_ref   : (1, 50)        f32    (resident; q_dense weight, row form)
#   bq_ref   : (1,)           f32    (SMEM scalar)
#   q_ref    : (1, TB)        f32    (lane-dense output row)
# ----------------------------------------------------------------------------
def critic_kernel(s_ref, a_ref, ws_ref, wa_ref, b_sa_ref, wq_ref, bq_ref, q_ref):
    # Fused input projection: s @ Ws + a @ Wa + (bs + ba)  -> (TB, 50), f32 acc.
    pre_q = (
        jnp.dot(s_ref[...], ws_ref[...], preferred_element_type=jnp.float32)
        + jnp.dot(a_ref[...], wa_ref[...], preferred_element_type=jnp.float32)
        + b_sa_ref[...]
    )
    pre_q = jnp.maximum(pre_q, 0.0)
    # Final 50 -> 1 layer as VPU multiply + lane reduce (no N=1 MXU matmul).
    q_col = jnp.sum(pre_q * wq_ref[...], axis=-1, keepdims=True) + bq_ref[0]  # (TB, 1)
    # One XLU transpose -> lane-dense (1, TB) row; wide unmasked store.
    q_ref[...] = q_col.T.astype(q_ref.dtype)
    # TODO(synk): if v5e bundle dumps show vreg spills at very large TB, chunk
    # this epilogue with a fori_loop over ~256-row sub-blocks (keep TB itself).


def _choose_tile(b, tile_b):
    """Pick the batch tile: large (amortize ~0.35us/grid-step), a multiple of
    128 whenever the block does not cover the full batch (lane-dense output
    block constraint), and split so big batches keep >= 2 grid steps so the
    "parallel" axis can use both v7x TensorCores (no-op on v5e/v6e)."""
    tb_cap = max(128, (tile_b // 128) * 128)
    if b > tb_cap:
        return tb_cap
    if b >= 2048:
        return _round_up(pl.cdiv(b, 2), 128)      # >= 2 grid steps
    if b % 8 == 0:
        return b                                  # single tile; block == full dims
    return min(_round_up(b, 128), tb_cap)         # partial tile, Pallas masks


# ----------------------------------------------------------------------------
# Wrapper
# ----------------------------------------------------------------------------
def critic_forward(s, a, fused_params, *, tile_b=4096):
    """s: (B, s_space), a: (B, a_space) -> q: (B, 1).  fused_params from fuse_params()."""
    w_s, w_a, b_sa, wq_row, bq = fused_params
    B, s_space = s.shape
    a_space = a.shape[1]
    h = w_s.shape[1]

    # bf16 activations: MXU-native inputs, half the DMA bytes. Epilogue is f32.
    s16 = s.astype(jnp.bfloat16)
    a16 = a.astype(jnp.bfloat16)

    tb = _choose_tile(B, tile_b)
    grid = (pl.cdiv(B, tb),)

    q_row = pl.pallas_call(
        critic_kernel,
        out_shape=jax.ShapeDtypeStruct((1, B), jnp.float32),
        grid=grid,
        in_specs=[
            pl.BlockSpec((tb, s_space), lambda i: (i, 0)),       # s tile, pipelined
            pl.BlockSpec((tb, a_space), lambda i: (i, 0)),       # a tile, pipelined
            pl.BlockSpec((s_space, h), lambda i: (0, 0)),        # Ws, resident
            pl.BlockSpec((a_space, h), lambda i: (0, 0)),        # Wa, resident
            pl.BlockSpec((1, h), lambda i: (0, 0)),              # b_sa, resident
            pl.BlockSpec((1, h), lambda i: (0, 0)),              # wq row, resident
            pl.BlockSpec(memory_space=pltpu.MemorySpace.SMEM),   # bq scalar
        ],
        out_specs=pl.BlockSpec((1, tb), lambda i: (0, i)),       # lane-dense row
        compiler_params=pltpu.CompilerParams(
            dimension_semantics=("parallel",),
        ),
    )(s16, a16, w_s, w_a, b_sa, wq_row, bq)

    # (1, B) row -> (B, 1) to match the module API (tiny, contiguous reshape).
    return q_row.reshape(B, 1)


# ----------------------------------------------------------------------------
# Params: PyTorch-Linear-style init, then one-time fusion/cast for the kernel.
# ----------------------------------------------------------------------------
def init_params(key, s_space, a_space):
    """Mimics PyTorch Linear default init: U(-1/sqrt(fan_in), 1/sqrt(fan_in))."""
    ks = jax.random.split(key, 6)

    def linear(kw, kb, fan_in, fan_out):
        bound = 1.0 / jnp.sqrt(jnp.float32(fan_in))
        w = jax.random.uniform(kw, (fan_in, fan_out), jnp.float32, -bound, bound)
        b = jax.random.uniform(kb, (1, fan_out), jnp.float32, -bound, bound)
        return w, b

    ws, bs = linear(ks[0], ks[1], s_space, HIDDEN)   # s_dense
    wa, ba = linear(ks[2], ks[3], a_space, HIDDEN)   # a_dense
    wq, bq = linear(ks[4], ks[5], HIDDEN, 1)         # q_dense
    return (ws, bs, wa, ba, wq, bq)


def fuse_params(params):
    """Static one-time transform of the PyTorch-layout params for the kernel."""
    ws, bs, wa, ba, wq, bq = params
    w_s = ws.astype(jnp.bfloat16)                    # (s_space, 50), MXU dtype
    w_a = wa.astype(jnp.bfloat16)                    # (a_space, 50)
    b_sa = (bs + ba).astype(jnp.float32)             # (1, 50) fused bias
    wq_row = wq.T.astype(jnp.float32)                # (1, 50)
    bq_s = bq.reshape(-1).astype(jnp.float32)        # (1,) SMEM scalar
    return (w_s, w_a, b_sa, wq_row, bq_s)


# ----------------------------------------------------------------------------
# References
# ----------------------------------------------------------------------------
def critic_ref(s, a, params):
    """Pure-JAX f32 reference matching the original PyTorch forward."""
    ws, bs, wa, ba, wq, bq = params
    hi = jax.lax.Precision.HIGHEST
    pre = jax.nn.relu(jnp.dot(s, ws, precision=hi) + bs
                      + jnp.dot(a, wa, precision=hi) + ba)
    return jnp.dot(pre, wq, precision=hi) + bq


def critic_ref_bf16(s, a, params):
    """Reference emulating the kernel's bf16-input / f32-accumulate matmuls."""
    ws, bs, wa, ba, wq, bq = params
    hi = jax.lax.Precision.HIGHEST
    r = lambda x: x.astype(jnp.bfloat16).astype(jnp.float32)
    pre = jax.nn.relu(jnp.dot(r(s), r(ws), precision=hi) + bs
                      + jnp.dot(r(a), r(wa), precision=hi) + ba)
    return jnp.sum(pre * wq.T, axis=-1, keepdims=True) + bq


if __name__ == "__main__":
    S_SPACE, A_SPACE = 16, 4

    key = jax.random.PRNGKey(0)
    k_p, k_data = jax.random.split(key)
    params = init_params(k_p, S_SPACE, A_SPACE)
    fused = fuse_params(params)

    # B=8: tiny single tile.  B=300: non-multiple-of-128 single partial tile.
    # B=2176: multi-tile path (2 "parallel" grid steps, partial last block).
    for B in (8, 300, 2176):
        ks, ka = jax.random.split(jax.random.fold_in(k_data, B))
        s = jax.random.normal(ks, (B, S_SPACE), jnp.float32)
        a = jax.random.normal(ka, (B, A_SPACE), jnp.float32)

        q = critic_forward(s, a, fused)
        jax.block_until_ready(q)
        assert q.shape == (B, 1), (B, q.shape)

        q_bf = critic_ref_bf16(s, a, params)   # same precision model as kernel
        q_fp = critic_ref(s, a, params)        # exact f32 module semantics
        assert jnp.allclose(q, q_bf, atol=1e-4, rtol=1e-4), \
            (B, float(jnp.max(jnp.abs(q - q_bf))))
        assert jnp.allclose(q, q_fp, atol=3e-2, rtol=3e-2), \
            (B, float(jnp.max(jnp.abs(q - q_fp))))

    print("KERNEL_OK")
</pallas_src>

<mosaic_0001>
module attributes {stable_mosaic.version = 11 : i64} {
  func.func @critic_kernel(%arg0: i32, %arg1: memref<8x16xbf16, #tpu.memory_space<vmem>>, %arg2: memref<8x4xbf16, #tpu.memory_space<vmem>>, %arg3: memref<16x50xbf16, #tpu.memory_space<vmem>>, %arg4: memref<4x50xbf16, #tpu.memory_space<vmem>>, %arg5: memref<1x50xf32, #tpu.memory_space<vmem>>, %arg6: memref<1x50xf32, #tpu.memory_space<vmem>>, %arg7: memref<1xf32, #tpu.memory_space<smem>>, %arg8: memref<1x8xf32, #tpu.memory_space<vmem>>) attributes {dimension_semantics = [#tpu.dimension_semantics<parallel>], iteration_bounds = array<i64: 1>, scalar_prefetch = 0 : i64, scratch_operands = 0 : i64, tpu.core_type = #tpu.core_type<tc>, window_params = [{transform_indices = @transform_0, window_bounds = array<i64: 8, 16>}, {transform_indices = @transform_1, window_bounds = array<i64: 8, 4>}, {pipeline_mode = #tpu.pipeline_mode<synchronous>, transform_indices = @transform_2, window_bounds = array<i64: 16, 50>}, {pipeline_mode = #tpu.pipeline_mode<synchronous>, transform_indices = @transform_3, window_bounds = array<i64: 4, 50>}, {pipeline_mode = #tpu.pipeline_mode<synchronous>, transform_indices = @transform_4, window_bounds = array<i64: 1, 50>}, {pipeline_mode = #tpu.pipeline_mode<synchronous>, transform_indices = @transform_5, window_bounds = array<i64: 1, 50>}, {transform_indices = @transform_6, window_bounds = array<i64: 1>}, {transform_indices = @transform_7, window_bounds = array<i64: 1, 8>}]} {
    %c0 = arith.constant 0 : index
    %c0_0 = arith.constant 0 : index
    %0 = vector.load %arg1[%c0, %c0_0] : memref<8x16xbf16, #tpu.memory_space<vmem>>, vector<8x16xbf16>
    %c0_1 = arith.constant 0 : index
    %c0_2 = arith.constant 0 : index
    %1 = vector.load %arg3[%c0_1, %c0_2] : memref<16x50xbf16, #tpu.memory_space<vmem>>, vector<16x50xbf16>
    %cst = arith.constant dense<0.000000e+00> : vector<8x50xf32>
    %2 = tpu.matmul %0, %1, %cst {dimension_numbers = #tpu.dot_dimension_numbers<[1], [0], [0], [1], [0, 0, 1, 1], [], []>} : vector<8x16xbf16>, vector<16x50xbf16>, vector<8x50xf32> -> vector<8x50xf32>
    %c0_3 = arith.constant 0 : index
    %c0_4 = arith.constant 0 : index
    %3 = vector.load %arg2[%c0_3, %c0_4] : memref<8x4xbf16, #tpu.memory_space<vmem>>, vector<8x4xbf16>
    %c0_5 = arith.constant 0 : index
    %c0_6 = arith.constant 0 : index
    %4 = vector.load %arg4[%c0_5, %c0_6] : memref<4x50xbf16, #tpu.memory_space<vmem>>, vector<4x50xbf16>
    %cst_7 = arith.constant dense<0.000000e+00> : vector<8x50xf32>
    %5 = tpu.matmul %3, %4, %cst_7 {dimension_numbers = #tpu.dot_dimension_numbers<[1], [0], [0], [1], [0, 0, 1, 1], [], []>} : vector<8x4xbf16>, vector<4x50xbf16>, vector<8x50xf32> -> vector<8x50xf32>
    %6 = arith.addf %2, %5 : vector<8x50xf32>
    %c0_8 = arith.constant 0 : index
    %c0_9 = arith.constant 0 : index
    %7 = vector.load %arg5[%c0_8, %c0_9] : memref<1x50xf32, #tpu.memory_space<vmem>>, vector<1x50xf32>
    %8 = vector.broadcast %7 : vector<1x50xf32> to vector<8x50xf32>
    %9 = arith.addf %6, %8 : vector<8x50xf32>
    %cst_10 = arith.constant 0.000000e+00 : f32
    %10 = vector.broadcast %cst_10 : f32 to vector<8x50xf32>
    %11 = arith.maximumf %9, %10 : vector<8x50xf32>
    %c0_11 = arith.constant 0 : index
    %c0_12 = arith.constant 0 : index
    %12 = vector.load %arg6[%c0_11, %c0_12] : memref<1x50xf32, #tpu.memory_space<vmem>>, vector<1x50xf32>
    %13 = vector.broadcast %12 : vector<1x50xf32> to vector<8x50xf32>
    %14 = arith.mulf %11, %13 : vector<8x50xf32>
    %cst_13 = arith.constant dense<0.000000e+00> : vector<8xf32>
    %15 = vector.multi_reduction <add>, %14, %cst_13 [1] : vector<8x50xf32> to vector<8xf32>
    %16 = vector.shape_cast %15 : vector<8xf32> to vector<8x1xf32>
    %c0_14 = arith.constant 0 : index
    %17 = memref.load %arg7[%c0_14] : memref<1xf32, #tpu.memory_space<smem>>
    %18 = vector.broadcast %17 : f32 to vector<8x1xf32>
    %19 = arith.addf %16, %18 : vector<8x1xf32>
    %20 = tpu.transpose %19, [1, 0] : vector<8x1xf32> -> vector<1x8xf32>
    %c0_15 = arith.constant 0 : index
    %c0_16 = arith.constant 0 : index
    %21 = vector.load %arg8[%c0_15, %c0_16] : memref<1x8xf32, #tpu.memory_space<vmem>>, vector<1x8xf32>
    tpu.vector_store %arg8[%c0_15, %c0_16], %20 {strides = array<i32>} : memref<1x8xf32, #tpu.memory_space<vmem>>, vector<1x8xf32>,
    return
  }
  func.func @transform_0(%arg0: i32) -> (i32, i32) {
    %c0_i32 = arith.constant 0 : i32
    %c0_i32_0 = arith.constant 0 : i32
    return %arg0, %c0_i32 : i32, i32
  }
  func.func @transform_1(%arg0: i32) -> (i32, i32) {
    %c0_i32 = arith.constant 0 : i32
    %c0_i32_0 = arith.constant 0 : i32
    return %arg0, %c0_i32 : i32, i32
  }
  func.func @transform_2(%arg0: i32) -> (i32, i32) {
    %c0_i32 = arith.constant 0 : i32
    %c0_i32_0 = arith.constant 0 : i32
    %c0_i32_1 = arith.constant 0 : i32
    return %c0_i32, %c0_i32_0 : i32, i32
  }
  func.func @transform_3(%arg0: i32) -> (i32, i32) {
    %c0_i32 = arith.constant 0 : i32
    %c0_i32_0 = arith.constant 0 : i32
    %c0_i32_1 = arith.constant 0 : i32
    return %c0_i32, %c0_i32_0 : i32, i32
  }
  func.func @transform_4(%arg0: i32) -> (i32, i32) {
    %c0_i32 = arith.constant 0 : i32
    %c0_i32_0 = arith.constant 0 : i32
    %c0_i32_1 = arith.constant 0 : i32
    return %c0_i32, %c0_i32_0 : i32, i32
  }
  func.func @transform_5(%arg0: i32) -> (i32, i32) {
    %c0_i32 = arith.constant 0 : i32
    %c0_i32_0 = arith.constant 0 : i32
    %c0_i32_1 = arith.constant 0 : i32
    return %c0_i32, %c0_i32_0 : i32, i32
  }
  func.func @transform_6(%arg0: i32) -> i32 {
    %c0_i32 = arith.constant 0 : i32
    %c0_i32_0 = arith.constant 0 : i32
    return %c0_i32 : i32
  }
  func.func @transform_7(%arg0: i32) -> (i32, i32) {
    %c0_i32 = arith.constant 0 : i32
    %c0_i32_0 = arith.constant 0 : i32
    return %c0_i32, %arg0 : i32, i32
  }
}

</mosaic_0001>

<bundles_post_ra>
// kernel: tpu_custom_call.1
= control target key start
LH: loop header
LB: loop body
LE: loop exit
PB: predicated region body
PF: predicated region fallthrough
CT: control target
= control target key end

     0   :  { %13 = vsyncpa [#allocation4], 0  ;;  %s355_s0 = inlined_call_operand.hbm [shape: bf16[8,16], index: 0, kind: input, shape index: {}]   ;;  %s356_s1 = inlined_call_operand.vmem [shape: bf16[8,4], index: 1, kind: input, shape index: {}]   ;;  %s357_s2 = inlined_call_operand.vmem [shape: bf16[16,50], index: 2, kind: input, shape index: {}]   ;;  %s358_s3 = inlined_call_operand.vmem [shape: bf16[4,50], index: 3, kind: input, shape index: {}]   ;;  %s359_s4 = inlined_call_operand.vmem [shape: f32[1,50], index: 4, kind: input, shape index: {}]   ;;  %s360_s5 = inlined_call_operand.vmem [shape: f32[1,50], index: 5, kind: input, shape index: {}]   ;;  %s361_s6 = inlined_call_operand.<no memory space> [shape: f32[1], index: 6, kind: input, shape index: {}]   ;;  %s362_s7 = inlined_call_operand.hbm [shape: f32[1,8], index: 7, kind: output, shape index: {}]  }
   0x1   :  { %14 = vsyncpa [#allocation5], 0  ;;  %s287_s24 = smov [#allocation3]  }
   0x2   :  { %s21_s25 = sshll.u32 %s287_s24, 4  ;;  %s22_s25 = int_to_ptr.vmem [resolvable:$true] %s21_s25 }
   0x3   :  { %s251_s26 = scalar_lea.vmem %s22_s25, 64  ;;  %p256_p1 = scmp.lt.s32.totalorder %s22_s25, %s22_s25 }
   0x4   :  { %p252_p0 = scmp.ne.s32.totalorder %s22_s25, %s251_s26  ;;  %p257_p2 = scmp.lt.s32.totalorder %s251_s26, %s251_s26 }
   0x6   :  { %p258_p3 = por %p257_p2, %p256_p1 }
   0x8   :  { %p259_p4 = pnand %p258_p3, %p252_p0 }
   0xa   :  { %262 = shalt.err (!%p259_p4)
}
   0xb   :  { %24 = dma.hbm_to_vmem [thread:$0]  %s355_s0, 64, %s22_s25, [#allocation4]  }
   0xc   :  { %283 = dma.done.wait [#allocation4], 64  }
   0xd   :  { %284 = vsyncadd [#allocation4], 4294967232  ;;  %v288_v0 = vmov 0.0   ;;  %vm289_vm0 = vmmov 0   ;;  %vm50_vm1 = vcmask 1041408   ;;  %v242_v3 = vld [vmem:[%s357_s2] sm:$0xff]   ;;  %v166_v21 = vstv %s361_s6 }
   0xe   :  { %226 = vmatprep.subr.bf16.mxu0 %v288_v0  ;;  %232 = vmatprep.subr.bf16.mxu1 %v288_v0  ;;  %v45_v1 = vld [vmem:[%s358_s3] sm:$0x3]  ;;  %vm46_vm2 = vcmask 31744   ;;  %vm100_vm3 = vcmask 130048   ;;  %vm161_vm4 = vcmask 408576   ;;  %vm200_vm5 = vcmask 57344  }
   0xf   :  { %228 = vmatprep.mubr.msk.bf16.mxu0 %vm289_vm0, %v288_v0  ;;  %234 = vmatprep.mubr.msk.bf16.mxu1 %vm289_vm0, %v288_v0  ;;  %v52_v2 = vsel %vm50_vm1, %v45_v1, 0  ;;  %v44_v4 = vld [vmem:[%s356_s1] sm:$0xf] }
  0x10   :  { %227 = vmatpush3.bf16.msra.mxu0 %v52_v2  ;;  %233 = vmatpush3.bf16.msra.mxu1 %v242_v3  ;;  %v41_v5 = vld [vmem:[#allocation3] sm:$0xf] }
  0x11   :  { %v220_v8 = vld [vmem:[%s359_s4] ss:$0 sm:$0xff]  ;;  %s290_s4 = smov [#allocation6]  }
  0x12   :  { %v221_v15 = vld [vmem:[%s360_s5] ss:$0 sm:$0xff]  ;;  %s208_s14 = sshll.u32 %s290_s4, 4  ;;  %s209_s14 = int_to_ptr.vmem [resolvable:$true] %s208_s14 }
  0x13   :  { %229 = vmatmul.mubr.msk.bf16.vlgmr.msra.gmra.mxu0 %vm46_vm2, %v44_v4  ;;  %235 = vmatmul.mubr.msk.bf16.vlgmr.msra.gmra.mxu1 %vm100_vm3, %v41_v5  ;;  %s263_s5 = scalar_lea.vmem %s209_s14, 16  ;;  %s267_s15 = scalar_lea.vmem %s209_s14, 32 }
  0x14   :  { %p264_p5 = scmp.ne.s32.totalorder %s209_s14, %s263_s5  ;;  %p268_p6 = scmp.lt.s32.totalorder %s209_s14, %s209_s14 }
  0x15   :  { %p269_p7 = scmp.lt.s32.totalorder %s267_s15, %s263_s5 }
  0x17   :  { %p270_p8 = por %p269_p7, %p268_p6 }
  0x19   :  { %p271_p9 = pnand %p270_p8, %p264_p5 }
  0xd3   :  { %v88_v6 = vpop.f32.mrf.mxu0  ;;  %v138_v7 = vpop.f32.mrf.mxu1 }
  0xd4   :  { %v139_v9 = vadd.f32 %v138_v7, %v88_v6 }
  0xd5   :  { %v230_v10 = vpop.f32.mrf.mxu0  ;;  %v236_v11 = vpop.f32.mrf.mxu1 }
  0xd6   :  { %v151_v12 = vadd.f32 %v220_v8, %v139_v9 }
  0xd7   :  { %v91_v13 = vpop.f32.mrf.mxu0  ;;  %v141_v14 = vpop.f32.mrf.mxu1 }
  0xd8   :  { %v152_v16 = vmax.f32 %v151_v12, 0.0 }
  0xd9   :  { %v231_v17 = vpop.f32.mrf.mxu0  ;;  %v237_v18 = vpop.f32.mrf.mxu1 }
  0xda   :  { %v160_v19 = vmul.f32 %v221_v15, %v152_v16 }
  0xdc   :  { %v162_v20 = vsel %vm161_vm4, %v160_v19, 0.0 }
  0xdd   :  { %163 = vadd.xlane.f32.xlu0 %v162_v20 }
 0x166   :  { %v164_v22 = vpop.xlane.xlu0 %163 }
 0x167   :  { %v167_v23 = vadd.f32 %v166_v21, %v164_v22 }
 0x169   :  { %168 = vxpose.xlu0.b32.start.end [1/1] (short) (narrow) %v167_v23, 8 }
 0x1e5   :  { %v184_v24 = vpop.trf.xlu0 }
 0x1e6   :  { %201 = vst.msk [vmem:[#allocation6] sm:$0x1] %vm200_vm5, %v184_v24 }
 0x1e7   :  { %274 = shalt.err (!%p271_p9)
}
 0x1e8   :  { %211 = dma.vmem_to_hbm [thread:$0]  %s209_s14, 16, %s362_s7, [#allocation5]  }
 0x1e9   :  { %285 = dma.done.wait [#allocation5], 16  }
 0x1ea   :  { %286 = vsyncadd [#allocation5], 4294967280 }
 0x1eb   :  { %215 = vsyncpa [#allocation4], 1 }
 0x1ec   :  { %216 = vsyncpa [#allocation5], 1 }

</bundles_post_ra>
